<compile_context>
chip_gen: v7x
topology: tpu7x:2x2x1
jax: 0.10.0
libtpu: 0.0.40
codegen_flags: <defaults>
</compile_context>

<pallas_src>
import functools

import jax
import jax.numpy as jnp
from jax.experimental import pallas as pl
from jax.experimental.pallas import tpu as pltpu


# -----------------------------------------------------------------------------
# Kernel 1: conv1 (1x1x1) + folded-BN shift + ReLU, channel-major, and the
# depth/spatial zero padding of the result is produced directly (no jnp.pad).
# One grid step = one padded output depth slice of one sample.
# -----------------------------------------------------------------------------
def _conv1_bn_relu_pad_kernel(x_ref, w1_ref, b1_ref, o_ref, *, D, H, W, dil):
    dp = pl.program_id(1)                       # padded depth index in [0, D+2*dil)
    cin = x_ref.shape[0]
    p = w1_ref.shape[0]
    interior = jnp.logical_and(dp >= dil, dp < D + dil)

    @pl.when(interior)
    def _():
        xb = x_ref[...].reshape(cin, H * W).astype(jnp.bfloat16)   # (Cin, HW)
        y = jnp.dot(w1_ref[...], xb, preferred_element_type=jnp.float32)
        y = jnp.maximum(y + b1_ref[...], 0.0).reshape(p, H, W)     # bn1 shift + relu
        # Build the spatially padded slab in registers/VMEM and do one full store.
        zw = jnp.zeros((p, H, dil), jnp.float32)
        y = jnp.concatenate([zw, y, zw], axis=2)                   # (p, H, Wp)
        zh = jnp.zeros((p, dil, W + 2 * dil), jnp.float32)
        y = jnp.concatenate([zh, y, zh], axis=1)                   # (p, Hp, Wp)
        o_ref[...] = y.astype(o_ref.dtype)

    @pl.when(jnp.logical_not(interior))
    def _():
        o_ref[...] = jnp.zeros_like(o_ref)                         # depth border


def conv1_bn_relu_padded(x, w1m, b1, dil, out_dtype=jnp.bfloat16):
    """x: (N, Cin, D, H, W) f32; returns padded out1 (N, P, D+2d, H+2d, W+2d)."""
    N, Cin, D, H, W = x.shape
    P = w1m.shape[0]
    Dp, Hp, Wp = D + 2 * dil, H + 2 * dil, W + 2 * dil
    b1c = b1.reshape(P, 1).astype(jnp.float32)

    def x_map(n, dp):
        # Clamp so border (zero) steps still get an in-range (unused) block.
        din = jnp.maximum(jnp.minimum(dp - dil, D - 1), 0)
        return (n, 0, din, 0, 0)

    kernel = functools.partial(_conv1_bn_relu_pad_kernel, D=D, H=H, W=W, dil=dil)
    return pl.pallas_call(
        kernel,
        out_shape=jax.ShapeDtypeStruct((N, P, Dp, Hp, Wp), out_dtype),
        grid_spec=pltpu.PrefetchScalarGridSpec(
            num_scalar_prefetch=0,
            grid=(N, Dp),
            in_specs=[
                pl.BlockSpec((None, Cin, None, H, W), x_map),      # one x depth slice
                pl.BlockSpec((P, Cin), lambda n, dp: (0, 0)),      # folded w1 (bf16)
                pl.BlockSpec((P, 1), lambda n, dp: (0, 0)),        # bn1 shift
            ],
            out_specs=pl.BlockSpec((None, P, None, Hp, Wp),
                                   lambda n, dp: (n, 0, dp, 0, 0)),
        ),
        compiler_params=pltpu.CompilerParams(
            dimension_semantics=("parallel", "parallel"),
            vmem_limit_bytes=32 * 1024 * 1024,
        ),
    )(x, w1m, b1c)


# -----------------------------------------------------------------------------
# Kernel 2: conv2 (3x3x3) + bn2 + relu  +  conv3 (1x1x1) + bn3 + residual + relu,
# fully fused and channel-major.  One grid step = one (sample, depth, H-tile).
# The 27 taps are concatenated into a (27P, rows) slab -> ONE K=27P matmul.
# -----------------------------------------------------------------------------
def _conv2_conv3_residual_kernel(x0_ref, x1_ref, x2_ref, w2_ref, b2_ref,
                                 w3_ref, b3_ref, res_ref, o_ref,
                                 *, W, dil, th, tile_h):
    P = w2_ref.shape[0]
    C4 = w3_ref.shape[0]
    rows = th * W
    taps = (x0_ref, x1_ref, x2_ref)             # three depth slices of the window

    if tile_h:
        h_base = pl.multiple_of(pl.program_id(2) * th, th)

    # Assemble the im2col slab in VMEM/registers: rows ordered (kd, kh, kw, cin)
    # to match w2 reshaped to (P, 27P).
    pieces = []
    for kd in range(3):
        for kh in range(3):
            if tile_h:
                sl = taps[kd][:, pl.ds(h_base + kh * dil, th), :]   # (P, th, Wp)
            else:
                sl = taps[kd][:, kh * dil:kh * dil + th, :]         # static slice
            for kw in range(3):
                pieces.append(sl[:, :, kw * dil:kw * dil + W].reshape(P, rows))
    patch = jnp.concatenate(pieces, axis=0)                         # (27P, rows) bf16

    # conv2 + bn2 shift + relu  (single K=27P MXU matmul, f32 accumulation).
    y = jnp.dot(w2_ref[...], patch, preferred_element_type=jnp.float32)   # (P, rows)
    y = jnp.maximum(y + b2_ref[...], 0.0).astype(jnp.bfloat16)

    # conv3 + bn3 shift + residual + relu, all without an HBM trip for y.
    z = jnp.dot(w3_ref[...], y, preferred_element_type=jnp.float32)       # (C4, rows)
    z = z + b3_ref[...] + res_ref[...].reshape(C4, rows)
    o_ref[...] = jnp.maximum(z, 0.0).reshape(C4, th, W).astype(o_ref.dtype)


def _pick_block_h(H, W, c4, out_block_budget=2 << 20):
    """Largest H-tile (multiple of 8, dividing H) whose f32 output block fits the
    budget; falls back to the full H (legal as a full-dim block) otherwise."""
    if H % 8 != 0:
        return H
    best = 8
    for t in range(8, H + 1, 8):
        if H % t == 0 and t * W * c4 * 4 <= out_block_budget:
            best = t
    return best


def fused_conv2_conv3(out1p, w2m, b2, w3m, b3, x, dil):
    """out1p: (N,P,Dp,Hp,Wp) bf16; x: (N,C4,D,H,W) f32 residual; -> (N,C4,D,H,W) f32."""
    N, C4, D, H, W = x.shape
    P = out1p.shape[1]
    Hp, Wp = out1p.shape[3], out1p.shape[4]
    th = _pick_block_h(H, W, C4)
    n_ht = H // th
    tile_h = n_ht > 1

    b2c = b2.reshape(P, 1).astype(jnp.float32)
    b3c = b3.reshape(C4, 1).astype(jnp.float32)

    def tap_spec(kd):
        # depth block size 1 (squeezed) => block index == element index; the H-tile
        # axis is ignored so the slab is fetched once per (n, d) and reused.
        return pl.BlockSpec((None, P, None, Hp, Wp),
                            lambda n, d, ht, kd=kd: (n, 0, d + kd * dil, 0, 0))

    kernel = functools.partial(_conv2_conv3_residual_kernel,
                               W=W, dil=dil, th=th, tile_h=tile_h)
    return pl.pallas_call(
        kernel,
        out_shape=jax.ShapeDtypeStruct((N, C4, D, H, W), jnp.float32),
        grid_spec=pltpu.PrefetchScalarGridSpec(
            num_scalar_prefetch=0,
            grid=(N, D, n_ht),
            in_specs=[
                tap_spec(0), tap_spec(1), tap_spec(2),
                pl.BlockSpec((P, 27 * P), lambda n, d, ht: (0, 0)),   # folded w2 (bf16)
                pl.BlockSpec((P, 1), lambda n, d, ht: (0, 0)),        # bn2 shift
                pl.BlockSpec((C4, P), lambda n, d, ht: (0, 0)),       # folded w3 (bf16)
                pl.BlockSpec((C4, 1), lambda n, d, ht: (0, 0)),       # bn3 shift
                pl.BlockSpec((None, C4, None, th, W),                 # residual = x
                             lambda n, d, ht: (n, 0, d, ht, 0)),
            ],
            out_specs=pl.BlockSpec((None, C4, None, th, W),
                                   lambda n, d, ht: (n, 0, d, ht, 0)),
        ),
        compiler_params=pltpu.CompilerParams(
            # H-tile axis kept "arbitrary" so consecutive tiles reuse the tap DMAs.
            dimension_semantics=("parallel", "parallel", "arbitrary"),
            vmem_limit_bytes=32 * 1024 * 1024,
        ),
    )(out1p, out1p, out1p, w2m, b2c, w3m, b3c, x)


# -----------------------------------------------------------------------------
# Glue: BN folding and the full Bottleneck forward (eval-mode BN, identity residual)
# -----------------------------------------------------------------------------
def _fold_bn(gamma, beta, mean, var, eps=1e-5):
    scale = gamma / jnp.sqrt(var + eps)
    shift = beta - mean * scale
    return scale, shift


def bottleneck_forward(x_ncdhw, params, stride=1, dilation=1):
    N, Cin, D, H, W = x_ncdhw.shape
    planes = params["conv1_w"].shape[0]
    c4 = planes * 4
    # downsample=None (module default) => identity residual.
    assert stride == 1 and Cin == c4, "downsample=None requires identity residual"

    # Fold BN scales into the weight rows (output channels); shifts stay in-kernel.
    s1, b1 = _fold_bn(*params["bn1"])
    w1m = (params["conv1_w"].reshape(planes, Cin) * s1[:, None]).astype(jnp.bfloat16)
    s2, b2 = _fold_bn(*params["bn2"])
    w2m = (jnp.transpose(params["conv2_w"], (0, 2, 3, 4, 1))        # (P, kd, kh, kw, P)
           .reshape(planes, 27 * planes) * s2[:, None]).astype(jnp.bfloat16)
    s3, b3 = _fold_bn(*params["bn3"])
    w3m = (params["conv3_w"].reshape(c4, planes) * s3[:, None]).astype(jnp.bfloat16)

    # conv1 + bn1 + relu, emitting the already-padded bf16 activation.
    out1p = conv1_bn_relu_padded(x_ncdhw, w1m, b1, dilation)

    # conv2 + bn2 + relu + conv3 + bn3 + residual + relu, all fused; output is NCDHW.
    out = fused_conv2_conv3(out1p, w2m, b2, w3m, b3, x_ncdhw, dilation)
    return out.astype(x_ncdhw.dtype)


# -----------------------------------------------------------------------------
# Pure-JAX f32 reference (module semantics) for the numerical check
# -----------------------------------------------------------------------------
def _ref_forward(x, params, stride=1, dilation=1):
    dn = ("NCDHW", "OIDHW", "NCDHW")

    def conv(x, w, stride=1, dilation=1, padding=0):
        return jax.lax.conv_general_dilated(
            x, w, window_strides=(stride,) * 3,
            padding=[(padding, padding)] * 3,
            rhs_dilation=(dilation,) * 3,
            dimension_numbers=dn)

    def bn(x, p):
        gamma, beta, mean, var = p
        scale = gamma / jnp.sqrt(var + 1e-5)
        shift = beta - mean * scale
        return x * scale[None, :, None, None, None] + shift[None, :, None, None, None]

    out = jnp.maximum(bn(conv(x, params["conv1_w"]), params["bn1"]), 0.0)
    out = jnp.maximum(
        bn(conv(out, params["conv2_w"], stride, dilation, dilation), params["bn2"]), 0.0)
    out = bn(conv(out, params["conv3_w"]), params["bn3"])
    out = out + x                                              # downsample is None
    return jnp.maximum(out, 0.0)


# -----------------------------------------------------------------------------
if __name__ == "__main__":
    N, inplanes, planes = 2, 16, 4            # inplanes == planes*4 (identity residual)
    D = H = W = 8
    stride, dilation = 1, 1

    key = jax.random.PRNGKey(0)
    k = jax.random.split(key, 16)
    x = jax.random.normal(k[0], (N, inplanes, D, H, W), jnp.float32)

    def bn_init(kg, kb, km, kv, c):
        gamma = jax.random.uniform(kg, (c,), jnp.float32, 0.5, 1.5)
        beta = 0.1 * jax.random.normal(kb, (c,), jnp.float32)
        mean = 0.1 * jax.random.normal(km, (c,), jnp.float32)
        var = jax.random.uniform(kv, (c,), jnp.float32, 0.5, 1.5)
        return (gamma, beta, mean, var)

    params = {
        "conv1_w": 0.2 * jax.random.normal(k[1], (planes, inplanes, 1, 1, 1), jnp.float32),
        "conv2_w": 0.1 * jax.random.normal(k[2], (planes, planes, 3, 3, 3), jnp.float32),
        "conv3_w": 0.2 * jax.random.normal(k[3], (planes * 4, planes, 1, 1, 1), jnp.float32),
        "bn1": bn_init(k[4], k[5], k[6], k[7], planes),
        "bn2": bn_init(k[8], k[9], k[10], k[11], planes),
        "bn3": bn_init(k[12], k[13], k[14], k[15], planes * 4),
    }

    out = bottleneck_forward(x, params, stride=stride, dilation=dilation)
    out = jax.block_until_ready(out)

    ref = _ref_forward(x, params, stride=stride, dilation=dilation)

    assert out.shape == (N, planes * 4, D, H, W), out.shape
    assert bool(jnp.all(jnp.isfinite(out)))
    # Tolerance sized for bf16 intermediates (out1, w1/w2/w3, conv3 input) with f32
    # accumulation and an f32 residual path.
    assert bool(jnp.allclose(out, ref, atol=5e-2, rtol=5e-2)), \
        f"mismatch vs reference: max abs err = {float(jnp.max(jnp.abs(out - ref)))}"
    print("KERNEL_OK")
</pallas_src>

<mosaic_0001>
module attributes {stable_mosaic.version = 11 : i64} {
  func.func @_conv1_bn_relu_pad_kernel(%arg0: i32, %arg1: i32, %arg2: memref<1x16x1x8x8xf32, #tpu.memory_space<vmem>>, %arg3: memref<4x16xbf16, #tpu.memory_space<vmem>>, %arg4: memref<4x1xf32, #tpu.memory_space<vmem>>, %arg5: memref<1x4x1x10x10xbf16, #tpu.memory_space<vmem>>) attributes {dimension_semantics = [#tpu.dimension_semantics<parallel>, #tpu.dimension_semantics<parallel>], iteration_bounds = array<i64: 2, 10>, scalar_prefetch = 0 : i64, scratch_operands = 0 : i64, tpu.core_type = #tpu.core_type<tc>, window_params = [{transform_indices = @transform_0, window_bounds = array<i64: 1, 16, 1, 8, 8>}, {pipeline_mode = #tpu.pipeline_mode<synchronous>, transform_indices = @transform_1, window_bounds = array<i64: 4, 16>}, {pipeline_mode = #tpu.pipeline_mode<synchronous>, transform_indices = @transform_2, window_bounds = array<i64: 4, 1>}, {transform_indices = @transform_3, window_bounds = array<i64: 1, 4, 1, 10, 10>}]} {
    %c1_i32 = arith.constant 1 : i32
    %0 = arith.cmpi sge, %arg1, %c1_i32 : i32
    %c9_i32 = arith.constant 9 : i32
    %1 = arith.cmpi slt, %arg1, %c9_i32 : i32
    %2 = arith.andi %0, %1 : i1
    %3 = arith.extui %2 : i1 to i32
    %c0_i32 = arith.constant 0 : i32
    %4 = arith.cmpi ne, %3, %c0_i32 : i32
    scf.if %4 {
      %c0 = arith.constant 0 : index
      %c0_1 = arith.constant 0 : index
      %c0_2 = arith.constant 0 : index
      %c0_3 = arith.constant 0 : index
      %c0_4 = arith.constant 0 : index
      %8 = vector.load %arg2[%c0, %c0_1, %c0_2, %c0_3, %c0_4] : memref<1x16x1x8x8xf32, #tpu.memory_space<vmem>>, vector<1x16x1x8x8xf32>
      %9 = vector.shape_cast %8 : vector<1x16x1x8x8xf32> to vector<16x8x8xf32>
      %10 = vector.shape_cast %9 : vector<16x8x8xf32> to vector<16x64xf32>
      %11 = arith.truncf %10 : vector<16x64xf32> to vector<16x64xbf16>
      %c0_5 = arith.constant 0 : index
      %c0_6 = arith.constant 0 : index
      %12 = vector.load %arg3[%c0_5, %c0_6] : memref<4x16xbf16, #tpu.memory_space<vmem>>, vector<4x16xbf16>
      %cst = arith.constant dense<0.000000e+00> : vector<4x64xf32>
      %13 = tpu.matmul %12, %11, %cst {dimension_numbers = #tpu.dot_dimension_numbers<[1], [0], [0], [1], [0, 0, 1, 1], [], []>} : vector<4x16xbf16>, vector<16x64xbf16>, vector<4x64xf32> -> vector<4x64xf32>
      %c0_7 = arith.constant 0 : index
      %c0_8 = arith.constant 0 : index
      %14 = vector.load %arg4[%c0_7, %c0_8] : memref<4x1xf32, #tpu.memory_space<vmem>>, vector<4x1xf32>
      %15 = vector.broadcast %14 : vector<4x1xf32> to vector<4x64xf32>
      %16 = arith.addf %13, %15 : vector<4x64xf32>
      %cst_9 = arith.constant 0.000000e+00 : f32
      %17 = vector.broadcast %cst_9 : f32 to vector<4x64xf32>
      %18 = arith.maximumf %16, %17 : vector<4x64xf32>
      %19 = vector.shape_cast %18 : vector<4x64xf32> to vector<4x8x8xf32>
      %cst_10 = arith.constant 0.000000e+00 : f32
      %20 = vector.broadcast %cst_10 : f32 to vector<4x8x1xf32>
      %21 = tpu.concatenate %20, %19, %20 in 2 : vector<4x8x1xf32>, vector<4x8x8xf32>, vector<4x8x1xf32> -> vector<4x8x10xf32>
      %cst_11 = arith.constant 0.000000e+00 : f32
      %22 = vector.broadcast %cst_11 : f32 to vector<4x1x10xf32>
      %23 = tpu.concatenate %22, %21, %22 in 1 : vector<4x1x10xf32>, vector<4x8x10xf32>, vector<4x1x10xf32> -> vector<4x10x10xf32>
      %24 = arith.truncf %23 : vector<4x10x10xf32> to vector<4x10x10xbf16>
      %c0_12 = arith.constant 0 : index
      %c0_13 = arith.constant 0 : index
      %c0_14 = arith.constant 0 : index
      %c0_15 = arith.constant 0 : index
      %c0_16 = arith.constant 0 : index
      %25 = vector.load %arg5[%c0_12, %c0_13, %c0_14, %c0_15, %c0_16] : memref<1x4x1x10x10xbf16, #tpu.memory_space<vmem>>, vector<1x4x1x10x10xbf16>
      %26 = vector.shape_cast %25 : vector<1x4x1x10x10xbf16> to vector<4x10x10xbf16>
      %27 = vector.shape_cast %24 : vector<4x10x10xbf16> to vector<1x4x1x10x10xbf16>
      tpu.vector_store %arg5[%c0_12, %c0_13, %c0_14, %c0_15, %c0_16], %27 {strides = array<i32>} : memref<1x4x1x10x10xbf16, #tpu.memory_space<vmem>>, vector<1x4x1x10x10xbf16>,
    } else {
    }
    %true = arith.constant true
    %5 = arith.xori %2, %true : i1
    %6 = arith.extui %5 : i1 to i32
    %c0_i32_0 = arith.constant 0 : i32
    %7 = arith.cmpi ne, %6, %c0_i32_0 : i32
    scf.if %7 {
      %cst = arith.constant 0.000000e+00 : bf16
      %8 = vector.broadcast %cst : bf16 to vector<4x10x10xbf16>
      %c0 = arith.constant 0 : index
      %c0_1 = arith.constant 0 : index
      %c0_2 = arith.constant 0 : index
      %c0_3 = arith.constant 0 : index
      %c0_4 = arith.constant 0 : index
      %9 = vector.load %arg5[%c0, %c0_1, %c0_2, %c0_3, %c0_4] : memref<1x4x1x10x10xbf16, #tpu.memory_space<vmem>>, vector<1x4x1x10x10xbf16>
      %10 = vector.shape_cast %9 : vector<1x4x1x10x10xbf16> to vector<4x10x10xbf16>
      %11 = vector.shape_cast %8 : vector<4x10x10xbf16> to vector<1x4x1x10x10xbf16>
      tpu.vector_store %arg5[%c0, %c0_1, %c0_2, %c0_3, %c0_4], %11 {strides = array<i32>} : memref<1x4x1x10x10xbf16, #tpu.memory_space<vmem>>, vector<1x4x1x10x10xbf16>,
    } else {
    }
    return
  }
  func.func @transform_0(%arg0: i32, %arg1: i32) -> (i32, i32, i32, i32, i32) {
    %c1_i32 = arith.constant 1 : i32
    %0 = arith.subi %arg1, %c1_i32 : i32
    %c7_i32 = arith.constant 7 : i32
    %1 = arith.minsi %0, %c7_i32 : i32
    %c0_i32 = arith.constant 0 : i32
    %2 = arith.maxsi %1, %c0_i32 : i32
    %c0_i32_0 = arith.constant 0 : i32
    %c0_i32_1 = arith.constant 0 : i32
    %c0_i32_2 = arith.constant 0 : i32
    %c0_i32_3 = arith.constant 0 : i32
    return %arg0, %c0_i32_0, %2, %c0_i32_1, %c0_i32_2 : i32, i32, i32, i32, i32
  }
  func.func @transform_1(%arg0: i32, %arg1: i32) -> (i32, i32) {
    %c0_i32 = arith.constant 0 : i32
    %c0_i32_0 = arith.constant 0 : i32
    %c0_i32_1 = arith.constant 0 : i32
    return %c0_i32, %c0_i32_0 : i32, i32
  }
  func.func @transform_2(%arg0: i32, %arg1: i32) -> (i32, i32) {
    %c0_i32 = arith.constant 0 : i32
    %c0_i32_0 = arith.constant 0 : i32
    %c0_i32_1 = arith.constant 0 : i32
    return %c0_i32, %c0_i32_0 : i32, i32
  }
  func.func @transform_3(%arg0: i32, %arg1: i32) -> (i32, i32, i32, i32, i32) {
    %c0_i32 = arith.constant 0 : i32
    %c0_i32_0 = arith.constant 0 : i32
    %c0_i32_1 = arith.constant 0 : i32
    %c0_i32_2 = arith.constant 0 : i32
    return %arg0, %c0_i32, %arg1, %c0_i32_0, %c0_i32_1 : i32, i32, i32, i32, i32
  }
}

</mosaic_0001>

<bundles_post_ra>
// kernel: tpu_custom_call.1
= control target key start
LH: loop header
LB: loop body
LE: loop exit
PB: predicated region body
PF: predicated region fallthrough
CT: control target
= control target key end

     0   :  { %s1407_s12 = smov 0   ;;  %s1409_s13 = smov 0   ;;  %s1712_s0 = inlined_call_operand.vmem [shape: f32[2,16,8,8,8], index: 0, kind: input, shape index: {}]   ;;  %s1713_s1 = inlined_call_operand.vmem [shape: bf16[4,16], index: 1, kind: input, shape index: {}]   ;;  %s1714_s2 = inlined_call_operand.vmem [shape: f32[4,1], index: 2, kind: input, shape index: {}]   ;;  %s1715_s3 = inlined_call_operand.vmem [shape: bf16[2,4,10,10,10], index: 3, kind: output, shape index: {}]  }
   0x1   :  { %s1411_s14 = smov 0   ;;  %s1413_s15 = smov 0  }
   0x2   :  { %s1415_s16 = smov 0   ;;  %s1417_s17 = smov 0  }
   0x3   :  { %s1419_s18 = smov 0   ;;  %s1421_s19 = smov 0  }
   0x4   :  { %s1423_s20 = smov 0  }
   0x5 LB: > { %s1065_s21 = sadd.s32 4294967295, %s1364_s20   ;;  %s22_s22 = sadd.s32 1, %s1356_s18  ;;  %s1364_s20 = sphi %s1423_s20, %s13_s20   ;;  %s1360_s19 = sphi %s1421_s19, %s1726_s19   ;;  %s1356_s18 = sphi %s1419_s18, %s1725_s18   ;;  %s1352_s17 = sphi %s1417_s17, %s1724_s17   ;;  %s1348_s16 = sphi %s1415_s16, %s1723_s16   ;;  %s1344_s15 = sphi %s1413_s15, %s1722_s15   ;;  %s1340_s14 = sphi %s1411_s14, %s1721_s14   ;;  %s1336_s13 = sphi %s1409_s13, %s1720_s13   ;;  %s1332_s12 = sphi %s1407_s12, %s1719_s12  }
   0x6   : > { %p23_p0 = scmp.ge.s32.totalorder %s22_s22, 10  ;;  %s25_s23 = sadd.s32 1, %s1360_s19 }
   0x7   : > { %s1067_s24 = sadd.s32 4294967295, %s1356_s18  ;;  %s44_s25 = sadd.s32 1, %s1344_s15 }
   0x8   : > { %s1728_s22 = smov (%p23_p0, %s22_s22), 0  ;;  %s1730_s23 = smov (!%p23_p0, %s25_s23), %s1360_s19 }
   0x9   : > { %p30_p1 = scmp.lt.s32.totalorder %s1067_s24, 7  ;;  %p1068_p2 = scmp.gt.s32.totalorder %s1067_s24, 0 }
   0xa   : > { %p27_p3 = scmp.ge.s32.totalorder %s1730_s23, 2  ;;  %s1073_s26 = sadd.s32 4294967295, %s1728_s22 }
   0xb   : > { %s1732_s24 = smov (!%p30_p1, %s1067_s24), 7  ;;  %p35_p4 = scmp.lt.s32.totalorder %s1073_s26, 7 }
   0xc   : > { %s1734_s23 = smov (%p27_p3, %s1730_s23), 0  ;;  %s1736_s24 = smov (!%p1068_p2, %s1732_s24), 0 }
   0xd   : > { %p1074_p5 = scmp.gt.s32.totalorder %s1073_s26, 0  ;;  %s39_s27 = ssub.s32 %s1360_s19, %s1734_s23 }
   0xe   : > { %p51_p6 = scmp.ne.s32.totalorder %s1344_s15, %s1340_s14  ;;  %s1738_s26 = smov (!%p35_p4, %s1073_s26), 7 }
   0xf   : > { %p52_p7 = scmp.eq.s32.totalorder %s1364_s20, 0  ;;  %s110_s28 = ssub.s32 %s1356_s18, %s1728_s22 }
  0x10   : > { %s1740_s26 = smov (!%p1074_p5, %s1738_s26), 0  ;;  %s111_s30 = sor.u32 %s110_s28, %s39_s27 }
  0x11   : > { %p1470_p8 = por %p52_p7, %p51_p6  ;;  %s40_s4 = ssub.s32 %s1736_s24, %s1740_s26 }
  0x12   : > { %p112_p9 = scmp.eq.s32.totalorder %s111_s30, 0  ;;  %s41_s5 = sor.u32 %s40_s4, %s39_s27 }
  0x13   : > { %s114_s6 = sadd.s32 1, %s1336_s13  ;;  %p42_p10 = scmp.eq.s32.totalorder %s41_s5, 0 }
  0x14   : > { %p124_p11 = scmp.ne.s32.totalorder %s1336_s13, %s1332_s12  ;;  %p125_p12 = scmp.eq.s32.totalorder %s1065_s21, 19 }
  0x15   : > { %s1478_s7 = scalar_select %p112_p9, %s1336_s13, %s114_s6  }
  0x16   : > { %s1481_s8 = scalar_select %p42_p10, %s1344_s15, %s44_s25  }
  0x17   : > { %p1485_p13 = por %p125_p12, %p124_p11  ;;  %p1080_p0 = scmp.ge.s32.totalorder %s1364_s20, 20 }
  0x19   : > { %153 = sbr.rel (%p1080_p0) target bundleno = 54 (0x36), region = 24 }
  0x20   : > { %156 = sbr.rel (!%p1470_p8) target bundleno = 54 (0x36), region = 28  ;;  %s158_s10 = sand.u32 (%p1470_p8), 1, %s1344_s15  }
  0x21   : > { %s1088_s11 = sshll.u32 (%p1470_p8), %s1360_s19, 7  ;;  %s1081_s26 = sshll.u32 (%p1470_p8), %s158_s10, 7 }
  0x22   : > { %s167_s27 = sadd.s32 (%p1470_p8), %s1736_s24, %s1088_s11  ;;  %s160_s29 = scalar_lea.vmem (%p1470_p8), [#allocation2], %s1081_s26 }
  0x23   : > { %s1089_s25 = sshll.u32 (%p1470_p8), %s167_s27, 3 }
  0x24   : > { %s1497_s21 = scalar_lea.vmem (%p1470_p8), %s1712_s0, %s1089_s25 }
  0x25   : > { %v227_v0 = vld [vmem:[%s1497_s21] sm:$0xff] (%p1470_p8) }
  0x26   : > { %v229_v1 = vld [vmem:[%s1497_s21 + $0x40] sm:$0xff] (%p1470_p8)  ;;  %228 = vst [vmem:[%s160_s29] sm:$0xff] (%p1470_p8), %v227_v0 }
  0x27   : > { %v231_v2 = vld [vmem:[%s1497_s21 + $0x80] sm:$0xff]  ;;  %230 = vst [vmem:[%s160_s29 + $0x8] sm:$0xff] %v229_v1 }
  0x28   : > { %232 = vst [vmem:[%s160_s29 + $0x10] sm:$0xff] %v231_v2  ;;  %v233_v3 = vld [vmem:[%s1497_s21 + $0xc0] sm:$0xff] }
  0x29   : > { %v235_v4 = vld [vmem:[%s1497_s21 + $0x100] sm:$0xff]  ;;  %234 = vst [vmem:[%s160_s29 + $0x18] sm:$0xff] %v233_v3 }
  0x2a   : > { %v237_v5 = vld [vmem:[%s1497_s21 + $0x140] sm:$0xff]  ;;  %236 = vst [vmem:[%s160_s29 + $0x20] sm:$0xff] %v235_v4 }
  0x2b   : > { %238 = vst [vmem:[%s160_s29 + $0x28] sm:$0xff] %v237_v5  ;;  %v239_v6 = vld [vmem:[%s1497_s21 + $0x180] sm:$0xff] }
  0x2c   : > { %v241_v7 = vld [vmem:[%s1497_s21 + $0x1c0] sm:$0xff]  ;;  %240 = vst [vmem:[%s160_s29 + $0x30] sm:$0xff] %v239_v6 }
  0x2d   : > { %v243_v8 = vld [vmem:[%s1497_s21 + $0x200] sm:$0xff]  ;;  %242 = vst [vmem:[%s160_s29 + $0x38] sm:$0xff] %v241_v7 }
  0x2e   : > { %244 = vst [vmem:[%s160_s29 + $0x40] sm:$0xff] %v243_v8  ;;  %v245_v9 = vld [vmem:[%s1497_s21 + $0x240] sm:$0xff] }
  0x2f   : > { %v247_v10 = vld [vmem:[%s1497_s21 + $0x280] sm:$0xff]  ;;  %246 = vst [vmem:[%s160_s29 + $0x48] sm:$0xff] %v245_v9 }
  0x30   : > { %v249_v11 = vld [vmem:[%s1497_s21 + $0x2c0] sm:$0xff]  ;;  %248 = vst [vmem:[%s160_s29 + $0x50] sm:$0xff] %v247_v10 }
  0x31   : > { %250 = vst [vmem:[%s160_s29 + $0x58] sm:$0xff] %v249_v11  ;;  %v251_v12 = vld [vmem:[%s1497_s21 + $0x300] sm:$0xff] }
  0x32   : > { %v253_v13 = vld [vmem:[%s1497_s21 + $0x340] sm:$0xff]  ;;  %252 = vst [vmem:[%s160_s29 + $0x60] sm:$0xff] %v251_v12 }
  0x33   : > { %v255_v14 = vld [vmem:[%s1497_s21 + $0x380] sm:$0xff]  ;;  %254 = vst [vmem:[%s160_s29 + $0x68] sm:$0xff] %v253_v13 }
  0x34   : > { %256 = vst [vmem:[%s160_s29 + $0x70] sm:$0xff] %v255_v14  ;;  %v257_v15 = vld [vmem:[%s1497_s21 + $0x3c0] sm:$0xff] }
  0x35   : > { %258 = vst [vmem:[%s160_s29 + $0x78] sm:$0xff] %v257_v15 }
  0x36 PF: > { %p1090_p1 = scmp.ge.s32.totalorder %s1364_s20, 1  ;;  %p263_p2 = scmp.lt.s32.totalorder %s1364_s20, 21 }
  0x38   : > { %p264_p3 = pnand %p1090_p1, %p263_p2 }
  0x39   : > { %s270_s24 = sand.u32 (!%p264_p3), 1, %s1340_s14   ;;  %s289_s4 = sand.u32 (!%p264_p3), 1, %s1332_s12  }
  0x3a   : > { %267 = sbr.rel (%p264_p3) target bundleno = 719 (0x2cf), region = 66  ;;  %s1091_s5 = sshll.u32 (!%p264_p3), %s270_s24, 7 }
  0x3b   : > { %s1092_s6 = sshll.u32 (!%p264_p3), %s289_s4, 5  ;;  %p298_p4 = scmp.ge.s32.totalorder (!%p264_p3), %s1348_s16, 1 }
  0x3c   : > { %p299_p5 = scmp.lt.s32.totalorder (!%p264_p3), %s1348_s16, 9  ;;  %s1525_s11 = scalar_lea.vmem (!%p264_p3), [#allocation2], %s1091_s5 }
  0x3d   : > { %s1527_s26 = scalar_lea.vmem (!%p264_p3), [#allocation3], %s1092_s6 }
  0x3e   : > { %p1521_p6 = pnand (!%p264_p3), %p299_p5, %p298_p4 }
  0x41   : > { %303 = sbr.rel (%p1521_p6) target bundleno = 704 (0x2c0), region = 74  ;;  %v325_v16 = vlaneseq (!%p1521_p6)  ;;  %v1366_v17 = vmov (!%p1521_p6), 1983009808   ;;  %v1367_v20 = vmov (!%p1521_p6), 1934713408   ;;  %s1368_s12 = smov (!%p1521_p6), 8  }
  0x42   : > { %v323_v18 = vunpack.c.l.s4 (!%p1521_p6), %v1366_v17  ;;  %v387_v21 = vunpack.c.l.s4 (!%p1521_p6), %v1367_v20  ;;  %v1270_v24 = vld [vmem:[%s1525_s11] ss:$16 sps:$4 sm:$0xff] (!%p1521_p6)   ;;  %v1272_v25 = vld [vmem:[%s1525_s11 + $0x4] ss:$16 sps:$4 sm:$0xff] (!%p1521_p6)   ;;  %v1273_v27 = vld [vmem:[%s1525_s11 + $0x8] ss:$16 sps:$4 sm:$0xff] (!%p1521_p6)  }
  0x43   : > { %v326_v19 = vshrl.u32 (!%p1521_p6), %v325_v16, 7  ;;  %v1275_v28 = vld [vmem:[%s1525_s11 + $0xc] ss:$16 sps:$4 sm:$0xff] (!%p1521_p6)   ;;  %v1276_v29 = vld [vmem:[%s1525_s11 + $0x20] ss:$16 sps:$4 sm:$0xff] (!%p1521_p6)   ;;  %s1369_s14 = smov (!%p1521_p6), 24  }
  0x44   : > { %v324_v22 = vunpack.c.0.s8 (!%p1521_p6), %v323_v18  ;;  %v388_v23 = vunpack.c.0.s8 (!%p1521_p6), %v387_v21  ;;  %v1278_v31 = vld [vmem:[%s1525_s11 + $0x24] ss:$16 sps:$4 sm:$0xff] (!%p1521_p6)   ;;  %v1279_v32 = vld [vmem:[%s1525_s11 + $0x28] ss:$16 sps:$4 sm:$0xff] (!%p1521_p6)   ;;  %v1281_v33 = vld [vmem:[%s1525_s11 + $0x2c] ss:$16 sps:$4 sm:$0xff] (!%p1521_p6)  }
  0x45   : > { %v1282_v38 = vld [vmem:[%s1525_s11 + $0x40] ss:$16 sps:$4 sm:$0xff] (!%p1521_p6)   ;;  %v1285_v39 = vld [vmem:[%s1525_s11 + $0x48] ss:$16 sps:$4 sm:$0xff] (!%p1521_p6)   ;;  %v1284_v55 = vld [vmem:[%s1525_s11 + $0x44] ss:$16 sps:$4 sm:$0xff] (!%p1521_p6)  }
  0x46   : > { %v1533_v26 = vsub.s32 (!%p1521_p6), %v324_v22, %v326_v19  ;;  %v1547_v37 = vsub.s32 (!%p1521_p6), %v388_v23, %v326_v19  ;;  %v1288_v42 = vld [vmem:[%s1525_s11 + $0x60] ss:$16 sps:$4 sm:$0xff] (!%p1521_p6)   ;;  %v1291_v48 = vld [vmem:[%s1525_s11 + $0x68] ss:$16 sps:$4 sm:$0xff] (!%p1521_p6)   ;;  %v1287_v60 = vld [vmem:[%s1525_s11 + $0x4c] ss:$16 sps:$4 sm:$0xff] (!%p1521_p6)  }
  0x47   : > { %v1290_v61 = vld [vmem:[%s1525_s11 + $0x64] ss:$16 sps:$4 sm:$0xff] (!%p1521_p6)   ;;  %v1293_v62 = vld [vmem:[%s1525_s11 + $0x6c] ss:$16 sps:$4 sm:$0xff] (!%p1521_p6)   ;;  %s1371_s27 = smov (!%p1521_p6), 16   ;;  %s1372_s25 = smov (!%p1521_p6), 32  }
  0x48   : > { %v328_v30 = vrot.slane %v1270_v24, %v1533_v26  ;;  %v1543_v34 = vrot.slane %v1272_v25, %v1533_v26  ;;  %v344_v35 = vrot.slane %v1273_v27, %v1533_v26  ;;  %v360_v36 = vrot.slane %v1276_v29, %v1533_v26  ;;  %s1374_s28 = smov 40   ;;  %s1376_s30 = smov 48  }
  0x49   : > { %v1552_v40 = vrot.slane %v1275_v28, %v1533_v26  ;;  %v376_v41 = vrot.slane %v1279_v32, %v1533_v26  ;;  %v1557_v43 = vrot.slane %v1278_v31, %v1533_v26  ;;  %v1560_v44 = vrot.slane %v1281_v33, %v1533_v26  ;;  %s1377_s24 = smov 56   ;;  %s1378_s6 = smov 112  }
  0x4a   : > { %v384_v45 = vcombine.low %v328_v30, %v344_v35  ;;  %v464_v46 = vrot.slane %v1282_v38, %v1533_v26  ;;  %v480_v47 = vrot.slane %v1285_v39, %v1533_v26  ;;  %v385_v49 = vcombine.high %v328_v30, %v344_v35  ;;  %s1379_s11 = smov 120  }
  0x4b   : > { %v416_v50 = vcombine.low %v360_v36, %v376_v41  ;;  %v496_v51 = vrot.slane %v1288_v42, %v1533_v26  ;;  %v417_v52 = vcombine.high %v360_v36, %v376_v41  ;;  %v400_v53 = vcombine.low %v1543_v34, %v1552_v40 }
  0x4c   : > { %v1569_v54 = vrot.slane %v384_v45, %v1547_v37  ;;  %v512_v56 = vrot.slane %v1291_v48, %v1533_v26  ;;  %v520_v57 = vcombine.low %v464_v46, %v480_v47  ;;  %v399_v58 = vrot.slane %v385_v49, %v1547_v37 }
  0x4d   : > { %v1575_v59 = vrot.slane %v416_v50, %v1547_v37  ;;  %v431_v63 = vrot.slane %v417_v52, %v1547_v37  ;;  %v521_v0 = vcombine.high %v464_v46, %v480_v47  ;;  %v408_v1 = vrot.slane %v400_v53, %v1547_v37  ;;  %v671_v53 = vld [vmem:[%s1714_s2] sm:$0xf] }
  0x4e   : > { %v1583_v2 = vrot.slane %v520_v57, %v1547_v37  ;;  %v552_v3 = vcombine.low %v496_v51, %v512_v56  ;;  %v553_v4 = vcombine.high %v496_v51, %v512_v56  ;;  %v432_v5 = vcombine.low %v1557_v43, %v1560_v44 }
  0x4f   : > { %v449_v6 = vcombine.high %v1569_v54, %v1575_v59  ;;  %v448_v7 = vcombine.low %v1569_v54, %v1575_v59  ;;  %v451_v8 = vcombine.high %v399_v58, %v431_v63  ;;  %v535_v9 = vrot.slane %v521_v0, %v1547_v37 }
  0x50   : > { %v1593_v10 = vrot.slane %v552_v3, %v1547_v37  ;;  %v567_v11 = vrot.slane %v553_v4, %v1547_v37  ;;  %v450_v12 = vcombine.low %v399_v58, %v431_v63  ;;  %v440_v13 = vrot.slane %v432_v5, %v1547_v37 }
  0x51   : > { %v471_v14 = vrot.slane %v1284_v55, %v1533_v26  ;;  %v487_v15 = vrot.slane %v1287_v60, %v1533_v26  ;;  %v503_v16 = vrot.slane %v1290_v61, %v1533_v26  ;;  %v519_v17 = vrot.slane %v1293_v62, %v1533_v26 }
  0x52   : > { %v584_v18 = vcombine.low %v1583_v2, %v1593_v10  ;;  %v585_v19 = vcombine.high %v1583_v2, %v1593_v10  ;;  %v587_v20 = vcombine.high %v535_v9, %v567_v11  ;;  %v586_v21 = vcombine.low %v535_v9, %v567_v11 }
  0x53   : > { %v452_v22 = vcombine.low %v408_v1, %v440_v13  ;;  %v536_v23 = vcombine.low %v471_v14, %v487_v15  ;;  %v568_v24 = vcombine.low %v503_v16, %v519_v17  ;;  %v453_v28 = vcombine.high %v408_v1, %v440_v13 }
  0x54   : > { %v1223_v25 = vpack.i.bf16 %v585_v19, %v449_v6  ;;  %v1233_v27 = vpack.i.bf16 %v587_v20, %v451_v8  ;;  %v401_v29 = vcombine.high %v1543_v34, %v1552_v40  ;;  %v433_v32 = vcombine.high %v1557_v43, %v1560_v44 }
  0x55   : > { %v544_v30 = vrot.slane %v536_v23, %v1547_v37  ;;  %v576_v31 = vrot.slane %v568_v24, %v1547_v37  ;;  %v537_v33 = vcombine.high %v471_v14, %v487_v15  ;;  %v1228_v35 = vpack.i.bf16 %v586_v21, %v450_v12 }
  0x56   : > { %1224 = vrot.lane.b32.xlu0 %v1223_v25, %s1368_s12  ;;  %1234 = vrot.lane.b32.xlu1 %v1233_v27, %s1369_s14  ;;  %v415_v36 = vrot.slane %v401_v29, %v1547_v37  ;;  %v569_v38 = vcombine.high %v503_v16, %v519_v17  ;;  %v447_v34 = vrot.slane %v433_v32, %v1547_v37  ;;  %v1370_v43 = vmov 0.0   ;;  %v670_v27 = vld [vmem:[%s1713_s1] sm:$0x3]  ;;  %s1380_s12 = smov 96   ;;  %s1381_s14 = smov 104  }
  0x57   : > { %v588_v39 = vcombine.low %v544_v30, %v576_v31  ;;  %v589_v41 = vcombine.high %v544_v30, %v576_v31  ;;  %v551_v40 = vrot.slane %v537_v33, %v1547_v37  ;;  %1123 = vmatprep.subr.bf16.mxu0 %v1370_v43  ;;  %vm1373_vm0 = vmmov 0  }
  0x58   : > { %v583_v42 = vrot.slane %v569_v38, %v1547_v37  ;;  %v454_v46 = vcombine.low %v415_v36, %v447_v34  ;;  %v455_v48 = vcombine.high %v415_v36, %v447_v34  ;;  %1125 = vmatprep.mubr.msk.bf16.mxu0 %vm1373_vm0, %v1370_v43  ;;  %v1375_v52 = vmov 0  }
  0x59   : > { %v1238_v45 = vpack.i.bf16 %v588_v39, %v452_v22  ;;  %v1243_v44 = vpack.i.bf16 %v589_v41, %v453_v28  ;;  %1258 = vset.pattern.permute.xlu1 %v1375_v52  ;;  %1269 = vset.pattern.permute.xlu0 %v1375_v52  ;;  %vm648_vm1 = vcmask 64512   ;;  %vm651_vm2 = vcmask 130048  }
  0x5a   : > { %1229 = vrot.lane.b32.xlu0 %v1228_v35, %s1371_s27  ;;  %v590_v47 = vcombine.low %v551_v40, %v583_v42  ;;  %v591_v49 = vcombine.high %v551_v40, %v583_v42  ;;  %vm654_vm3 = vcmask 195584   ;;  %vm657_vm4 = vcmask 261120   ;;  %s1382_s27 = smov 80  }
  0x5b   : > { %1239 = vrot.lane.b32.xlu1 %v1238_v45, %s1372_s25  ;;  %vm660_vm5 = vcmask 326656   ;;  %vm663_vm6 = vcmask 392192   ;;  %vm666_vm7 = vcmask 457728   ;;  %s1383_s25 = smov 88   ;;  %vm827_vm8 = vcmask 7168  }
  0x5c   : > { %v1248_v50 = vpack.i.bf16 %v590_v47, %v454_v46  ;;  %v1253_v51 = vpack.i.bf16 %v591_v49, %v455_v48  ;;  %vm832_vm9 = vcmask 72704   ;;  %vm849_vm10 = vcmask 1040384  }
  0x5d   : > { %vm890_vm11 = vcmask 76800   ;;  %vm892_vm12 = vcmask 73728  }
  0x5e   : > { %1244 = vrot.lane.b32.xlu0 %v1243_v44, %s1374_s28  ;;  %s1384_s28 = smov 72  }
  0x5f   : > { %1249 = vrot.lane.b32.xlu1 %v1248_v50, %s1376_s30  ;;  %s1385_s30 = smov 1  }
  0x62   : > { %1254 = vrot.lane.b32.xlu0 %v1253_v51, %s1377_s24 }
  0x63   : > { %674 = vperm.xlu1 %1258, %v671_v53  }
  0xc8   : > { %v1225_v55 = vpop.permute.xlu0 %1224  ;;  %v1235_v56 = vpop.permute.xlu1 %1234 }
  0xc9   : > { %v1227_v57 = vunpack.i.h.bf16 %v1225_v55  ;;  %v1226_v58 = vunpack.i.l.bf16 %v1225_v55  ;;  %v1237_v61 = vunpack.i.h.bf16 %v1235_v56  ;;  %v1236_v62 = vunpack.i.l.bf16 %v1235_v56 }
  0xcb   : > { %v650_v3 = vsel %vm648_vm1, %v584_v18, %v1227_v57  ;;  %v649_v4 = vsel %vm648_vm1, %v448_v7, %v1226_v58 }
  0xcc   : > { %v1230_v60 = vpop.permute.xlu0 %1229 }
  0xcd   : > { %v1232_v63 = vunpack.i.h.bf16 %v1230_v60  ;;  %v1231_v0 = vunpack.i.l.bf16 %v1230_v60  ;;  %v1240_v1 = vpop.permute.xlu1 %1239 }
  0xce   : > { %v1242_v5 = vunpack.i.h.bf16 %v1240_v1  ;;  %v1241_v6 = vunpack.i.l.bf16 %v1240_v1 }
  0xcf   : > { %v652_v8 = vsel %vm651_vm2, %v649_v4, %v1231_v0  ;;  %v653_v9 = vsel %vm651_vm2, %v650_v3, %v1232_v63 }
  0xd0   : > { %v655_v11 = vsel %vm654_vm3, %v652_v8, %v1236_v62  ;;  %v656_v12 = vsel %vm654_vm3, %v653_v9, %v1237_v61  ;;  %v1245_v13 = vpop.permute.xlu0 %1244 }
  0xd1   : > { %v658_v14 = vsel %vm657_vm4, %v655_v11, %v1241_v6  ;;  %v659_v15 = vsel %vm657_vm4, %v656_v12, %v1242_v5  ;;  %v1247_v2 = vunpack.i.h.bf16 %v1245_v13  ;;  %v1246_v10 = vunpack.i.l.bf16 %v1245_v13  ;;  %v1250_v16 = vpop.permute.xlu1 %1249 }
  0xd2   : > { %v1252_v17 = vunpack.i.h.bf16 %v1250_v16  ;;  %v1251_v54 = vunpack.i.l.bf16 %v1250_v16 }
  0xd3   : > { %v661_v59 = vsel %vm660_vm5, %v658_v14, %v1246_v10  ;;  %v662_v7 = vsel %vm660_vm5, %v659_v15, %v1247_v2 }
  0xd4   : > { %v1255_v18 = vpop.permute.xlu0 %1254  ;;  %v664_v21 = vsel %vm663_vm6, %v661_v59, %v1251_v54  ;;  %v665_v22 = vsel %vm663_vm6, %v662_v7, %v1252_v17 }
  0xd5   : > { %v1257_v19 = vunpack.i.h.bf16 %v1255_v18  ;;  %v1256_v20 = vunpack.i.l.bf16 %v1255_v18 }
  0xd7   : > { %v667_v23 = vsel %vm666_vm7, %v664_v21, %v1256_v20  ;;  %v668_v24 = vsel %vm666_vm7, %v665_v22, %v1257_v19 }
  0xd8   : > { %v669_v25 = vpack.c.bf16 %v668_v24, %v667_v23 }
  0xda   : > { %1124 = vmatpush3.bf16.msra.mxu0 %v669_v25 }
  0xdd   : > { %1126 = vmatmul.mubr.msk.bf16.vlgmr.msra.gmra.mrb[0].mxu0 %vm651_vm2, %v670_v27 }
  0xe2   : > { %v675_v28 = vpop.permute.xlu1 %674 }
 0x1b0   : > { %v714_v29 = vpop.f32.mrb[0].mxu0 }
 0x1b1   : > { %v715_v30 = vadd.f32 %v714_v29, %v675_v28  ;;  %v1127_v31 = vpop.f32.mrb[1].mxu0 }
 0x1b2   : > { %v717_v32 = vpop.f32.mrb[2].mxu0 }
 0x1b3   : > { %v720_v33 = vmax.f32 %v715_v30, 0.0  ;;  %v1128_v35 = vpop.f32.mrb[3].mxu0 }
 0x1b5   : > { %725 = vrot.lane.b32.xlu1 %v720_v33, %s1378_s6  ;;  %722 = vrot.lane.b32.xlu0 %v720_v33, %s1379_s11 }
 0x1b9   : > { %731 = vrot.lane.b32.xlu1 %v720_v33, %s1380_s12  ;;  %728 = vrot.lane.b32.xlu0 %v720_v33, %s1381_s14 }
 0x1bd   : > { %737 = vrot.lane.b32.xlu1 %v720_v33, %s1382_s27  ;;  %734 = vrot.lane.b32.xlu0 %v720_v33, %s1383_s25 }
 0x1c1   : > { %740 = vrot.lane.b32.xlu0 %v720_v33, %s1384_s28 }
 0x227   : > { %v726_v36 = vpop.permute.xlu1 %725  ;;  %v723_v38 = vpop.permute.xlu0 %722 }
 0x228   : > { %v743_v45 = vcombine.low %v720_v33, %v726_v36 }
 0x22a   : > { %v750_v47 = vrot.slane %v743_v45, %v1533_v26 }
 0x22b   : > { %v732_v39 = vpop.permute.xlu1 %731  ;;  %v729_v41 = vpop.permute.xlu0 %728 }
 0x22c   : > { %v751_v34 = vcombine.low %v723_v38, %v729_v41 }
 0x22e   : > { %v758_v46 = vrot.slane %v751_v34, %v1533_v26 }
 0x22f   : > { %v738_v40 = vpop.permute.xlu1 %737  ;;  %v735_v42 = vpop.permute.xlu0 %734 }
 0x230   : > { %v759_v43 = vcombine.low %v732_v39, %v738_v40  ;;  %v775_v49 = vcombine.low %v750_v47, %v758_v46  ;;  %v776_v50 = vcombine.high %v750_v47, %v758_v46 }
 0x232   : > { %v766_v51 = vrot.slane %v759_v43, %v1533_v26  ;;  %v783_v56 = vrot.slane %v775_v49, %v1547_v37  ;;  %v790_v57 = vrot.slane %v776_v50, %v1547_v37 }
 0x233   : > { %v741_v44 = vpop.permute.xlu0 %740 }
 0x234   : > { %v767_v48 = vcombine.low %v735_v42, %v741_v44 }
 0x236   : > { %v774_v52 = vrot.slane %v767_v48, %v1533_v26 }
 0x238   : > { %v791_v53 = vcombine.low %v766_v51, %v774_v52  ;;  %v792_v55 = vcombine.high %v766_v51, %v774_v52 }
 0x23a   : > { %v799_v58 = vrot.slane %v791_v53, %v1547_v37  ;;  %v806_v60 = vrot.slane %v792_v55, %v1547_v37 }
 0x23c   : > { %v809_v61 = vcombine.low %v790_v57, %v806_v60  ;;  %v810_v62 = vcombine.high %v790_v57, %v806_v60  ;;  %v807_v63 = vcombine.low %v783_v56, %v799_v58  ;;  %v808_v0 = vcombine.high %v783_v56, %v799_v58 }
 0x23e   : > { %v1264_v1 = vpack.i.bf16 %v810_v62, %v809_v61  ;;  %v1259_v3 = vpack.i.bf16 %v808_v0, %v807_v63 }
 0x240   : > { %1265 = vrot.lane.b32.xlu0 %v1264_v1, %s1385_s30  ;;  %1260 = vrot.lane.b32.xlu1 %v1259_v3, %s1385_s30 }
 0x2b2   : > { %v1266_v26 = vpop.permute.xlu0 %1265  ;;  %v1261_v4 = vpop.permute.xlu1 %1260 }
 0x2b3   : > { %v1268_v5 = vunpack.i.h.bf16 %v1266_v26  ;;  %v1267_v6 = vunpack.i.l.bf16 %v1266_v26  ;;  %v1263_v8 = vunpack.i.h.bf16 %v1261_v4  ;;  %v1262_v9 = vunpack.i.l.bf16 %v1261_v4 }
 0x2b5   : > { %v831_v11 = vsel %vm827_vm8, 0.0, %v1268_v5  ;;  %v830_v37 = vsel %vm827_vm8, 0.0, %v1267_v6  ;;  %v829_v12 = vsel %vm827_vm8, 0.0, %v1263_v8  ;;  %v828_v13 = vsel %vm827_vm8, 0.0, %v1262_v9 }
 0x2b6   : > { %v836_v14 = vsel %vm832_vm9, %v831_v11, 0.0  ;;  %v835_v15 = vsel %vm832_vm9, %v830_v37, 0.0  ;;  %v834_v2 = vsel %vm832_vm9, %v829_v12, 0.0  ;;  %v833_v10 = vsel %vm832_vm9, %v828_v13, 0.0 }
 0x2b7   : > { %v844_v16 = vrot.slane %v836_v14, 7  ;;  %v843_v17 = vrot.slane %v835_v15, 7  ;;  %v842_v54 = vrot.slane %v834_v2, 7  ;;  %v841_v59 = vrot.slane %v833_v10, 7 }
 0x2b9   : > { %v853_v7 = vsel %vm849_vm10, 0.0, %v844_v16  ;;  %v857_v18 = vsel %vm849_vm10, %v844_v16, 0.0  ;;  %v852_v19 = vsel %vm849_vm10, 0.0, %v843_v17  ;;  %v856_v20 = vsel %vm849_vm10, %v843_v17, 0.0 }
 0x2ba   : > { %v1119_v21 = vpack.c.bf16 %v853_v7, %v853_v7  ;;  %v1120_v22 = vpack.c.bf16 %v857_v18, %v857_v18  ;;  %v1117_v23 = vpack.c.bf16 %v852_v19, %v852_v19  ;;  %v1118_v24 = vpack.c.bf16 %v856_v20, %v856_v20 }
 0x2bb   : > { %v851_v25 = vsel %vm849_vm10, 0.0, %v842_v54  ;;  %v855_v27 = vsel %vm849_vm10, %v842_v54, 0.0  ;;  %v850_v28 = vsel %vm849_vm10, 0.0, %v841_v59  ;;  %v854_v29 = vsel %vm849_vm10, %v841_v59, 0.0 }
 0x2bc   : > { %898 = vst.msk [vmem:[%s1527_s26 + $0x18] sm:$0xf] %vm890_vm11, %v1119_v21  ;;  %896 = vst.msk [vmem:[%s1527_s26 + $0x10] sm:$0xf] %vm890_vm11, %v1117_v23  ;;  %v1115_v30 = vpack.c.bf16 %v851_v25, %v851_v25  ;;  %v1116_v31 = vpack.c.bf16 %v855_v27, %v855_v27  ;;  %v1113_v32 = vpack.c.bf16 %v850_v28, %v850_v28 }
 0x2bd   : > { %899 = vst.msk [vmem:[%s1527_s26 + $0x1c] sm:$0x1] %vm892_vm12, %v1120_v22  ;;  %897 = vst.msk [vmem:[%s1527_s26 + $0x14] sm:$0x1] %vm892_vm12, %v1118_v24  ;;  %v1114_v33 = vpack.c.bf16 %v854_v29, %v854_v29 }
 0x2be   : > { %894 = vst.msk [vmem:[%s1527_s26 + $0x8] sm:$0xf] %vm890_vm11, %v1115_v30  ;;  %891 = vst.msk [vmem:[%s1527_s26] sm:$0xf] %vm890_vm11, %v1113_v32 }
 0x2bf   : > { %895 = vst.msk [vmem:[%s1527_s26 + $0xc] sm:$0x1] %vm892_vm12, %v1116_v31  ;;  %893 = vst.msk [vmem:[%s1527_s26 + $0x4] sm:$0x1] %vm892_vm12, %v1114_v33 }
 0x2c0 PF: > { %902 = sbr.rel (!%p1521_p6) target bundleno = 711 (0x2c7), region = 78  ;;  %vm903_vm13 = vcmask (%p1521_p6), 76800   ;;  %vm905_vm14 = vcmask (%p1521_p6), 73728   ;;  %v1386_v35 = vmov (%p1521_p6), 0  }
 0x2c1   : > { %904 = vst.msk [vmem:[%s1527_s26] sm:$0xf] (%p1521_p6), %vm903_vm13, %v1386_v35  ;;  %907 = vst.msk [vmem:[%s1527_s26 + $0x8] sm:$0xf] (%p1521_p6), %vm903_vm13, %v1386_v35 }
 0x2c2   : > { %909 = vst.msk [vmem:[%s1527_s26 + $0x10] sm:$0xf] (%p1521_p6), %vm903_vm13, %v1386_v35  ;;  %911 = vst.msk [vmem:[%s1527_s26 + $0x18] sm:$0xf] (%p1521_p6), %vm903_vm13, %v1386_v35 }
 0x2c3   : > { %906 = vst.msk [vmem:[%s1527_s26 + $0x4] sm:$0x1] (%p1521_p6), %vm905_vm14, %v1386_v35  ;;  %908 = vst.msk [vmem:[%s1527_s26 + $0xc] sm:$0x1] (%p1521_p6), %vm905_vm14, %v1386_v35 }
 0x2c4   : > { %910 = vst.msk [vmem:[%s1527_s26 + $0x14] sm:$0x1] (%p1521_p6), %vm905_vm14, %v1386_v35  ;;  %912 = vst.msk [vmem:[%s1527_s26 + $0x1c] sm:$0x1] (%p1521_p6), %vm905_vm14, %v1386_v35 }
 0x2c7 PF: > { %919 = sbr.rel (!%p1485_p13) target bundleno = 719 (0x2cf), region = 82  ;;  %s1103_s10 = sshll.u32 (%p1485_p13), %s1348_s16, 1 }
 0x2c8   : > { %s1129_s21 = smul.u32 (%p1485_p13), 80, %s1352_s17 }
 0x2ca   : > { %v940_v36 = vld [vmem:[%s1527_s26] sm:$0xff] (%p1485_p13)   ;;  %s922_s29 = sadd.s32 (%p1485_p13), %s1129_s21, %s1103_s10  ;;  %v944_v38 = vld [vmem:[%s1527_s26 + $0x8] sm:$0xff] (%p1485_p13)  }
 0x2cb   : > { %v948_v39 = vld [vmem:[%s1527_s26 + $0x10] sm:$0xff] (%p1485_p13)   ;;  %v952_v41 = vld [vmem:[%s1527_s26 + $0x18] sm:$0xff] (%p1485_p13)   ;;  %s1104_s24 = sshll.u32 (%p1485_p13), %s922_s29, 2 }
 0x2cc   : > { %s924_s6 = scalar_lea.vmem (%p1485_p13), %s1715_s3, %s1104_s24 }
 0x2cd   : > { %941 = vst [vmem:[%s924_s6] sm:$0xff] (%p1485_p13), %v940_v36   ;;  %945 = vst [vmem:[%s924_s6 + $0x50] sm:$0xff] (%p1485_p13), %v944_v38  }
 0x2ce   : > { %949 = vst [vmem:[%s924_s6 + $0xa0] sm:$0xff] %v948_v39   ;;  %953 = vst [vmem:[%s924_s6 + $0xf0] sm:$0xff] %v952_v41  }
 0x2cf PF: > { %s13_s20 = sadd.s32 1, %s1364_s20   ;;  %s1719_s12 = smov %s1336_s13 }
 0x2d0   : > { %p10_p7 = scmp.ge.s32.totalorder %s13_s20, 22   ;;  %s1720_s13 = smov %s1478_s7 }
 0x2d1   : > { %s1721_s14 = smov %s1344_s15  ;;  %s1722_s15 = smov %s1481_s8 }
 0x2d2   : > { %s1723_s16 = smov %s1356_s18  ;;  %s1724_s17 = smov %s1360_s19 }
 0x2d3   : > { %s1725_s18 = smov %s1728_s22  ;;  %s1726_s19 = smov %s1734_s23 }
 0x2d4   :  { %12 = sbr.rel (!%p10_p7) target bundleno = 5 (0x5), region = 154 }

</bundles_post_ra>
